<compile_context>
chip_gen: v6e
topology: v6e:2x2x1
jax: 0.10.0
libtpu: 0.0.40
codegen_flags: <defaults>
</compile_context>

<pallas_src>
import functools

import numpy as np
import jax
import jax.numpy as jnp
from jax.experimental import pallas as pl
from jax.experimental.pallas import tpu as pltpu


def _round_up(v, m):
    return (v + m - 1) // m * m


def _attention_pool_kernel(x_ref, pos_ref, wqkv_ref, wout_ref, b_ref, o_ref, *,
                           bt, hw, emb, ecol, nheads):
    """One grid step = `bt` images.

    x_ref   : (bt, C, HW)       activations, NCHW layout (transpose happens here, on XLU)
    pos_ref : (HW+1, E)         positional embedding, pooled-token row LAST
    wqkv_ref: (E, 3*ECOL)       [Wq^T*scale | Wk^T | Wv^T], each section lane-padded
    wout_ref: (ECOL, OPAD)      c_proj weight, rows padded E->ECOL, cols padded O->OPAD
    b_ref   : (1, 3*ECOL+OPAD)  all biases (q part pre-scaled), f32
    o_ref   : (bt, 1, OPAD)
    """
    f32 = jnp.float32
    hd = emb // nheads

    w_qkv = wqkv_ref[...]                         # compute dtype (bf16 in production)
    b_all = b_ref[...]                            # f32
    b_qkv = b_all[:, :3 * ecol]
    b_out = b_all[:, 3 * ecol:]

    # Batch-invariant positional projection, once per grid step (linearity:
    # (x + pos) @ W + b == x @ W + (pos @ W + b)).  Row `hw` is the pooled-token row.
    pos_qkv = jnp.dot(pos_ref[...], w_qkv, preferred_element_type=f32) + b_qkv  # (HW+1, 3ECOL)
    pos_qkv_sp = pos_qkv[:hw, :]                  # (HW, 3ECOL) spatial rows
    pos_qkv_0 = pos_qkv[hw:, :]                   # (1, 3ECOL)  pooled-token row

    # In-kernel NCHW -> token transpose (XLU; overlaps the MXU work below), then ONE
    # batched MXU projection for all `bt` images in this step.
    xt = jnp.transpose(x_ref[...], (0, 2, 1)).reshape(bt * hw, emb)   # (bt*HW, E)
    qkv_raw = jnp.dot(xt, w_qkv, preferred_element_type=f32)          # (bt*HW, 3ECOL) f32
    # TODO(synk): at CLIP HW=49 the (bt,HW,E)->(bt*HW,E) flatten is not sublane-tile
    # aligned; keep a batched dot_general (per-image LHS) there instead.

    # Per-head lane mask (nheads, ECOL) generated from iota (no extra input / DMA).
    col = jax.lax.broadcasted_iota(jnp.int32, (nheads, ecol), 1)
    row = jax.lax.broadcasted_iota(jnp.int32, (nheads, ecol), 0)
    head_mask = jnp.where((col >= row * hd) & (col < (row + 1) * hd),
                          1.0, 0.0).astype(f32)

    ctx_rows = []
    for b in range(bt):                           # bt is a small static MXU-fill tile
        raw_b = qkv_raw[b * hw:(b + 1) * hw, :]                       # (HW, 3ECOL)
        qkv_sp = raw_b + pos_qkv_sp                                   # spatial token qkv
        # Pooled (mean) token via linearity: mean(x) @ W == mean(x @ W) -> no extra
        # 1-row MXU push per image.
        qkv_0 = jnp.mean(raw_b, axis=0, keepdims=True) + pos_qkv_0    # (1, 3ECOL)

        q0 = qkv_0[:, :ecol]                  # pooled query (1/sqrt(hd) pre-folded)
        k0 = qkv_0[:, ecol:2 * ecol]          # pooled token is also a key / value
        v0 = qkv_0[:, 2 * ecol:]
        k_sp = qkv_sp[:, ecol:2 * ecol]       # (HW, ECOL) -- 128-aligned slices
        v_sp = qkv_sp[:, 2 * ecol:]

        # Multi-head attention with the single pooled query: heads as lane masks, two
        # MXU contractions, no per-head reshapes / concatenates.
        q_h = head_mask * q0                                          # (nh, ECOL)
        s_sp = jax.lax.dot_general(q_h, k_sp, (((1,), (1,)), ((), ())),
                                   preferred_element_type=f32)        # (nh, HW)
        s_0 = jnp.sum(q_h * k0, axis=1, keepdims=True)                # (nh, 1)

        m = jnp.maximum(jnp.max(s_sp, axis=1, keepdims=True), s_0)
        p_sp = jnp.exp(s_sp - m)
        p_0 = jnp.exp(s_0 - m)
        denom = jnp.sum(p_sp, axis=1, keepdims=True) + p_0
        inv = pl.reciprocal(denom, approx=True)                       # EUP slot
        inv = inv * (2.0 - denom * inv)                               # Newton refine

        ctx_h = (jnp.dot(p_sp, v_sp, preferred_element_type=f32) + p_0 * v0) * inv
        ctx_rows.append(jnp.sum(ctx_h * head_mask, axis=0, keepdims=True))   # (1, ECOL)

    ctx = ctx_rows[0] if bt == 1 else jnp.concatenate(ctx_rows, axis=0)       # (bt, ECOL)

    # Output projection for the whole tile + single full-tile, lane-dense store.
    out = jnp.dot(ctx.astype(wout_ref.dtype), wout_ref[...],
                  preferred_element_type=f32) + b_out                          # (bt, OPAD)
    o_ref[...] = out.reshape(o_ref.shape).astype(o_ref.dtype)


def attention_pool2d(x_nchw, params, num_heads, *,
                     compute_dtype=jnp.bfloat16, batch_tile=None):
    """Pallas forward of AttentionPool2d.  x_nchw: (N, C, H, W) -> (N, output_dim).

    compute_dtype: dtype of MXU operands (x / pos / weights).  bf16 is the recommended
    production setting (native MXU dtype, halves weight DMA + VMEM residency); biases,
    accumulation and softmax stay f32.
    """
    N, C, Himg, Wimg = x_nchw.shape
    E, HW = C, Himg * Wimg
    O = params["c_w"].shape[0]
    assert E % num_heads == 0
    scale = 1.0 / np.sqrt(E // num_heads)

    if batch_tile is None:
        batch_tile = N
    assert N % batch_tile == 0

    ECOL = _round_up(E, 128)      # lane-align each q/k/v section -> free column slices
    OPAD = _round_up(O, 128)      # lane-dense, unmasked output stores
    f32 = jnp.float32

    def padc(a, t):               # zero-pad last dim to width t
        if a.shape[-1] == t:
            return a
        return jnp.pad(a, [(0, 0)] * (a.ndim - 1) + [(0, t - a.shape[-1])])

    # Activations stay NCHW; the HW<->C transpose runs in-kernel on the XLU instead of
    # paying an extra HBM read+write for an XLA transpose.
    x3 = x_nchw.reshape(N, C, HW).astype(compute_dtype)

    # Positional embedding with the pooled-token row moved LAST (aligned slices).
    pos = params["positional_embedding"].astype(f32)
    pos_packed = jnp.concatenate([pos[1:], pos[:1]], axis=0).astype(compute_dtype)

    # Fused QKV slab [Wq^T*scale | Wk^T | Wv^T]; scale folded in f32 BEFORE the cast.
    w_qkv = jnp.concatenate(
        [padc(params["q_w"].T.astype(f32) * scale, ECOL),
         padc(params["k_w"].T.astype(f32), ECOL),
         padc(params["v_w"].T.astype(f32), ECOL)], axis=1).astype(compute_dtype)
    w_out = jnp.pad(params["c_w"].T.astype(f32),
                    [(0, ECOL - E), (0, OPAD - O)]).astype(compute_dtype)
    b_slab = jnp.concatenate(
        [padc(params["q_b"].astype(f32) * scale, ECOL),
         padc(params["k_b"].astype(f32), ECOL),
         padc(params["v_b"].astype(f32), ECOL),
         padc(params["c_b"].astype(f32), OPAD)]).reshape(1, 3 * ECOL + OPAD)

    kernel = functools.partial(_attention_pool_kernel, bt=batch_tile, hw=HW,
                               emb=E, ecol=ECOL, nheads=num_heads)

    # Explicit VMEM budget (v5e scoped default is 16 MiB; v7x physical VMEM is 64 MiB).
    total_in_bytes = sum(int(np.prod(a.shape)) * a.dtype.itemsize
                         for a in (x3, pos_packed, w_qkv, w_out, b_slab))
    vmem_limit = int(min(64 * 2 ** 20, max(16 * 2 ** 20, 4 * total_in_bytes)))
    # TODO(synk): at CLIP-RN50x widths where the bf16 slab alone approaches v7x's 64 MiB,
    # add a grid axis over the 3*ECOL weight columns (stream (E, 512..1024) tiles) and/or
    # prefetch the slab from a previous pallas_call (cross-call DMA future).

    grid = (N // batch_tile,)
    out = pl.pallas_call(
        kernel,
        out_shape=jax.ShapeDtypeStruct((N, 1, OPAD), x_nchw.dtype),
        grid=grid,
        in_specs=[
            pl.BlockSpec((batch_tile, C, HW), lambda n: (n, 0, 0)),   # per-step x tile
            pl.BlockSpec((HW + 1, E), lambda n: (0, 0)),              # resident
            pl.BlockSpec((E, 3 * ECOL), lambda n: (0, 0)),            # resident
            pl.BlockSpec((ECOL, OPAD), lambda n: (0, 0)),             # resident
            pl.BlockSpec((1, 3 * ECOL + OPAD), lambda n: (0, 0)),     # resident
        ],
        out_specs=pl.BlockSpec((batch_tile, 1, OPAD), lambda n: (n, 0, 0)),
        compiler_params=pltpu.CompilerParams(
            dimension_semantics=("parallel",),      # megacore batch sharding on v7x
            vmem_limit_bytes=vmem_limit),
    )(x3, pos_packed, w_qkv, w_out, b_slab)

    return out.reshape(N, OPAD)[:, :O]


def attention_pool2d_ref(x_nchw, params, num_heads):
    """Pure-JAX reference mirroring the PyTorch module / F.multi_head_attention_forward."""
    N, C, H, W = x_nchw.shape
    E, HW = C, H * W
    hd = E // num_heads
    scale = hd ** -0.5

    x = jnp.transpose(x_nchw.reshape(N, C, HW), (2, 0, 1))                  # (HW, N, E)
    x = jnp.concatenate([jnp.mean(x, axis=0, keepdims=True), x], axis=0)    # (S, N, E)
    x = x + params["positional_embedding"][:, None, :]
    S = HW + 1

    q = (x[0:1] @ params["q_w"].T + params["q_b"]) * scale                  # (1, N, E)
    k = x @ params["k_w"].T + params["k_b"]                                 # (S, N, E)
    v = x @ params["v_w"].T + params["v_b"]

    def heads(t):
        return jnp.transpose(t.reshape(t.shape[0], N, num_heads, hd), (1, 2, 0, 3))

    qh, kh, vh = heads(q), heads(k), heads(v)                               # (N,nh,L,hd)
    logits = qh @ jnp.swapaxes(kh, -1, -2)                                  # (N,nh,1,S)
    attn = jax.nn.softmax(logits, axis=-1)
    ctx = attn @ vh                                                         # (N,nh,1,hd)
    ctx = jnp.transpose(ctx, (0, 2, 1, 3)).reshape(N, E)
    return ctx @ params["c_w"].T + params["c_b"]                            # (N, O)


if __name__ == "__main__":
    # Small synthetic config: batch=2, embed_dim=32, spacial_dim=4 (seq=17),
    # num_heads=4, output_dim=64.
    N, E, SPACIAL, NUM_HEADS, OUT_DIM = 2, 32, 4, 4, 64
    S = SPACIAL * SPACIAL + 1

    key = jax.random.PRNGKey(0)
    ks = jax.random.split(key, 10)
    params = {
        "positional_embedding": jax.random.normal(ks[0], (S, E), jnp.float32) / np.sqrt(E),
        "q_w": jax.random.normal(ks[1], (E, E), jnp.float32) / np.sqrt(E),
        "q_b": 0.1 * jax.random.normal(ks[2], (E,), jnp.float32),
        "k_w": jax.random.normal(ks[3], (E, E), jnp.float32) / np.sqrt(E),
        "k_b": 0.1 * jax.random.normal(ks[4], (E,), jnp.float32),
        "v_w": jax.random.normal(ks[5], (E, E), jnp.float32) / np.sqrt(E),
        "v_b": 0.1 * jax.random.normal(ks[6], (E,), jnp.float32),
        "c_w": jax.random.normal(ks[7], (OUT_DIM, E), jnp.float32) / np.sqrt(E),
        "c_b": 0.1 * jax.random.normal(ks[8], (OUT_DIM,), jnp.float32),
    }
    x = jax.random.normal(ks[9], (N, E, SPACIAL, SPACIAL), jnp.float32)

    ref = jax.block_until_ready(attention_pool2d_ref(x, params, NUM_HEADS))

    # 1) f32 operands, batch_tile=1 (2 grid steps on the "parallel" batch axis):
    #    strict numerical check of the kernel math.
    out_f32 = jax.block_until_ready(
        attention_pool2d(x, params, NUM_HEADS, compute_dtype=jnp.float32, batch_tile=1))
    np.testing.assert_allclose(np.asarray(out_f32), np.asarray(ref), rtol=1e-2, atol=1e-3)

    # 2) bf16 operands (recommended production path), whole batch in one grid step:
    #    tolerance reflects bf16 operand rounding (accumulation / softmax stay f32).
    out_bf16 = jax.block_until_ready(
        attention_pool2d(x, params, NUM_HEADS, compute_dtype=jnp.bfloat16, batch_tile=2))
    np.testing.assert_allclose(np.asarray(out_bf16), np.asarray(ref), rtol=5e-2, atol=5e-2)

    print("KERNEL_OK")
</pallas_src>

<mosaic_0001>
module attributes {stable_mosaic.version = 11 : i64} {
  func.func @_attention_pool_kernel(%arg0: i32, %arg1: memref<1x32x16xf32, #tpu.memory_space<vmem>>, %arg2: memref<17x32xf32, #tpu.memory_space<vmem>>, %arg3: memref<32x384xf32, #tpu.memory_space<vmem>>, %arg4: memref<128x128xf32, #tpu.memory_space<vmem>>, %arg5: memref<1x512xf32, #tpu.memory_space<vmem>>, %arg6: memref<1x1x128xf32, #tpu.memory_space<vmem>>) attributes {dimension_semantics = [#tpu.dimension_semantics<parallel>], iteration_bounds = array<i64: 2>, scalar_prefetch = 0 : i64, scratch_operands = 0 : i64, tpu.core_type = #tpu.core_type<tc>, window_params = [{transform_indices = @transform_0, window_bounds = array<i64: 1, 32, 16>}, {pipeline_mode = #tpu.pipeline_mode<synchronous>, transform_indices = @transform_1, window_bounds = array<i64: 17, 32>}, {pipeline_mode = #tpu.pipeline_mode<synchronous>, transform_indices = @transform_2, window_bounds = array<i64: 32, 384>}, {pipeline_mode = #tpu.pipeline_mode<synchronous>, transform_indices = @transform_3, window_bounds = array<i64: 128, 128>}, {pipeline_mode = #tpu.pipeline_mode<synchronous>, transform_indices = @transform_4, window_bounds = array<i64: 1, 512>}, {transform_indices = @transform_5, window_bounds = array<i64: 1, 1, 128>}]} {
    %c0 = arith.constant 0 : index
    %c0_0 = arith.constant 0 : index
    %0 = vector.load %arg3[%c0, %c0_0] : memref<32x384xf32, #tpu.memory_space<vmem>>, vector<32x384xf32>
    %c0_1 = arith.constant 0 : index
    %c0_2 = arith.constant 0 : index
    %1 = vector.load %arg5[%c0_1, %c0_2] : memref<1x512xf32, #tpu.memory_space<vmem>>, vector<1x512xf32>
    %2 = vector.extract_strided_slice %1 {offsets = [0, 0], sizes = [1, 384], strides = [1, 1]} : vector<1x512xf32> to vector<1x384xf32>
    %3 = vector.extract_strided_slice %1 {offsets = [0, 384], sizes = [1, 128], strides = [1, 1]} : vector<1x512xf32> to vector<1x128xf32>
    %c0_3 = arith.constant 0 : index
    %c0_4 = arith.constant 0 : index
    %4 = vector.load %arg2[%c0_3, %c0_4] : memref<17x32xf32, #tpu.memory_space<vmem>>, vector<17x32xf32>
    %cst = arith.constant dense<0.000000e+00> : vector<17x384xf32>
    %5 = tpu.matmul %4, %0, %cst {dimension_numbers = #tpu.dot_dimension_numbers<[1], [0], [0], [1], [0, 0, 1, 1], [], []>} : vector<17x32xf32>, vector<32x384xf32>, vector<17x384xf32> -> vector<17x384xf32>
    %6 = vector.broadcast %2 : vector<1x384xf32> to vector<17x384xf32>
    %7 = arith.addf %5, %6 : vector<17x384xf32>
    %8 = vector.extract_strided_slice %7 {offsets = [0, 0], sizes = [16, 384], strides = [1, 1]} : vector<17x384xf32> to vector<16x384xf32>
    %9 = vector.extract_strided_slice %7 {offsets = [16, 0], sizes = [1, 384], strides = [1, 1]} : vector<17x384xf32> to vector<1x384xf32>
    %c0_5 = arith.constant 0 : index
    %c0_6 = arith.constant 0 : index
    %c0_7 = arith.constant 0 : index
    %10 = vector.load %arg1[%c0_5, %c0_6, %c0_7] : memref<1x32x16xf32, #tpu.memory_space<vmem>>, vector<1x32x16xf32>
    %11 = tpu.transpose %10, [0, 2, 1] : vector<1x32x16xf32> -> vector<1x16x32xf32>
    %12 = vector.shape_cast %11 : vector<1x16x32xf32> to vector<16x32xf32>
    %cst_8 = arith.constant dense<0.000000e+00> : vector<16x384xf32>
    %13 = tpu.matmul %12, %0, %cst_8 {dimension_numbers = #tpu.dot_dimension_numbers<[1], [0], [0], [1], [0, 0, 1, 1], [], []>} : vector<16x32xf32>, vector<32x384xf32>, vector<16x384xf32> -> vector<16x384xf32>
    %14 = tpu.iota {dimensions = array<i32: 1>} : vector<4x128xi32>
    %15 = tpu.iota {dimensions = array<i32: 0>} : vector<4x128xi32>
    %c8_i32 = arith.constant 8 : i32
    %16 = vector.broadcast %c8_i32 : i32 to vector<4x128xi32>
    %17 = arith.muli %15, %16 : vector<4x128xi32>
    %18 = arith.cmpi sge, %14, %17 : vector<4x128xi32>
    %c1_i32 = arith.constant 1 : i32
    %19 = vector.broadcast %c1_i32 : i32 to vector<4x128xi32>
    %20 = arith.addi %15, %19 : vector<4x128xi32>
    %c8_i32_9 = arith.constant 8 : i32
    %21 = vector.broadcast %c8_i32_9 : i32 to vector<4x128xi32>
    %22 = arith.muli %20, %21 : vector<4x128xi32>
    %23 = arith.cmpi slt, %14, %22 : vector<4x128xi32>
    %24 = arith.andi %18, %23 : vector<4x128xi1>
    %cst_10 = arith.constant 1.000000e+00 : f32
    %cst_11 = arith.constant 0.000000e+00 : f32
    %25 = vector.broadcast %cst_10 : f32 to vector<4x128xf32>
    %26 = vector.broadcast %cst_11 : f32 to vector<4x128xf32>
    %27 = arith.select %24, %25, %26 : vector<4x128xi1>, vector<4x128xf32>
    %28 = arith.addf %13, %8 : vector<16x384xf32>
    %cst_12 = arith.constant dense<0.000000e+00> : vector<384xf32>
    %29 = vector.multi_reduction <add>, %13, %cst_12 [0] : vector<16x384xf32> to vector<384xf32>
    %30 = vector.shape_cast %29 : vector<384xf32> to vector<1x384xf32>
    %cst_13 = arith.constant 1.600000e+01 : f32
    %31 = vector.broadcast %cst_13 : f32 to vector<1x384xf32>
    %32 = arith.divf %30, %31 : vector<1x384xf32>
    %33 = arith.addf %32, %9 : vector<1x384xf32>
    %34 = vector.extract_strided_slice %33 {offsets = [0, 0], sizes = [1, 128], strides = [1, 1]} : vector<1x384xf32> to vector<1x128xf32>
    %35 = vector.extract_strided_slice %33 {offsets = [0, 128], sizes = [1, 128], strides = [1, 1]} : vector<1x384xf32> to vector<1x128xf32>
    %36 = vector.extract_strided_slice %33 {offsets = [0, 256], sizes = [1, 128], strides = [1, 1]} : vector<1x384xf32> to vector<1x128xf32>
    %37 = vector.extract_strided_slice %28 {offsets = [0, 128], sizes = [16, 128], strides = [1, 1]} : vector<16x384xf32> to vector<16x128xf32>
    %38 = vector.extract_strided_slice %28 {offsets = [0, 256], sizes = [16, 128], strides = [1, 1]} : vector<16x384xf32> to vector<16x128xf32>
    %39 = vector.broadcast %34 : vector<1x128xf32> to vector<4x128xf32>
    %40 = arith.mulf %27, %39 : vector<4x128xf32>
    %cst_14 = arith.constant dense<0.000000e+00> : vector<4x16xf32>
    %41 = tpu.matmul %40, %37, %cst_14 {dimension_numbers = #tpu.dot_dimension_numbers<[1], [1], [0], [0], [0, 0, 1, 0], [], []>} : vector<4x128xf32>, vector<16x128xf32>, vector<4x16xf32> -> vector<4x16xf32>
    %42 = vector.broadcast %35 : vector<1x128xf32> to vector<4x128xf32>
    %43 = arith.mulf %40, %42 : vector<4x128xf32>
    %cst_15 = arith.constant dense<0.000000e+00> : vector<4xf32>
    %44 = vector.multi_reduction <add>, %43, %cst_15 [1] : vector<4x128xf32> to vector<4xf32>
    %45 = vector.shape_cast %44 : vector<4xf32> to vector<4x1xf32>
    %cst_16 = arith.constant dense<0xFF800000> : vector<4xf32>
    %46 = vector.multi_reduction <maximumf>, %41, %cst_16 [1] : vector<4x16xf32> to vector<4xf32>
    %47 = vector.shape_cast %46 : vector<4xf32> to vector<4x1xf32>
    %48 = arith.maximumf %47, %45 : vector<4x1xf32>
    %49 = vector.broadcast %48 : vector<4x1xf32> to vector<4x16xf32>
    %50 = arith.subf %41, %49 : vector<4x16xf32>
    %51 = math.exp %50 : vector<4x16xf32>
    %52 = arith.subf %45, %48 : vector<4x1xf32>
    %53 = math.exp %52 : vector<4x1xf32>
    %cst_17 = arith.constant dense<0.000000e+00> : vector<4xf32>
    %54 = vector.multi_reduction <add>, %51, %cst_17 [1] : vector<4x16xf32> to vector<4xf32>
    %55 = vector.shape_cast %54 : vector<4xf32> to vector<4x1xf32>
    %56 = arith.addf %55, %53 : vector<4x1xf32>
    %57 = tpu.reciprocal %56 {approx = true} : vector<4x1xf32> -> vector<4x1xf32>
    %58 = arith.mulf %56, %57 : vector<4x1xf32>
    %cst_18 = arith.constant 2.000000e+00 : f32
    %59 = vector.broadcast %cst_18 : f32 to vector<4x1xf32>
    %60 = arith.subf %59, %58 : vector<4x1xf32>
    %61 = arith.mulf %57, %60 : vector<4x1xf32>
    %cst_19 = arith.constant dense<0.000000e+00> : vector<4x128xf32>
    %62 = tpu.matmul %51, %38, %cst_19 {dimension_numbers = #tpu.dot_dimension_numbers<[1], [0], [0], [1], [0, 0, 1, 1], [], []>} : vector<4x16xf32>, vector<16x128xf32>, vector<4x128xf32> -> vector<4x128xf32>
    %63 = vector.broadcast %53 : vector<4x1xf32> to vector<4x128xf32>
    %64 = vector.broadcast %36 : vector<1x128xf32> to vector<4x128xf32>
    %65 = arith.mulf %63, %64 : vector<4x128xf32>
    %66 = arith.addf %62, %65 : vector<4x128xf32>
    %67 = vector.broadcast %61 : vector<4x1xf32> to vector<4x128xf32>
    %68 = arith.mulf %66, %67 : vector<4x128xf32>
    %69 = arith.mulf %68, %27 : vector<4x128xf32>
    %cst_20 = arith.constant dense<0.000000e+00> : vector<128xf32>
    %70 = vector.multi_reduction <add>, %69, %cst_20 [0] : vector<4x128xf32> to vector<128xf32>
    %71 = vector.shape_cast %70 : vector<128xf32> to vector<1x128xf32>
    %c0_21 = arith.constant 0 : index
    %c0_22 = arith.constant 0 : index
    %72 = vector.load %arg4[%c0_21, %c0_22] : memref<128x128xf32, #tpu.memory_space<vmem>>, vector<128x128xf32>
    %cst_23 = arith.constant dense<0.000000e+00> : vector<1x128xf32>
    %73 = tpu.matmul %71, %72, %cst_23 {dimension_numbers = #tpu.dot_dimension_numbers<[1], [0], [0], [1], [0, 0, 1, 1], [], []>} : vector<1x128xf32>, vector<128x128xf32>, vector<1x128xf32> -> vector<1x128xf32>
    %74 = arith.addf %73, %3 : vector<1x128xf32>
    %75 = vector.shape_cast %74 : vector<1x128xf32> to vector<1x1x128xf32>
    %c0_24 = arith.constant 0 : index
    %c0_25 = arith.constant 0 : index
    %c0_26 = arith.constant 0 : index
    %76 = vector.load %arg6[%c0_24, %c0_25, %c0_26] : memref<1x1x128xf32, #tpu.memory_space<vmem>>, vector<1x1x128xf32>
    tpu.vector_store %arg6[%c0_24, %c0_25, %c0_26], %75 {strides = array<i32>} : memref<1x1x128xf32, #tpu.memory_space<vmem>>, vector<1x1x128xf32>,
    return
  }
  func.func @transform_0(%arg0: i32) -> (i32, i32, i32) {
    %c0_i32 = arith.constant 0 : i32
    %c0_i32_0 = arith.constant 0 : i32
    %c0_i32_1 = arith.constant 0 : i32
    return %arg0, %c0_i32, %c0_i32_0 : i32, i32, i32
  }
  func.func @transform_1(%arg0: i32) -> (i32, i32) {
    %c0_i32 = arith.constant 0 : i32
    %c0_i32_0 = arith.constant 0 : i32
    %c0_i32_1 = arith.constant 0 : i32
    return %c0_i32, %c0_i32_0 : i32, i32
  }
  func.func @transform_2(%arg0: i32) -> (i32, i32) {
    %c0_i32 = arith.constant 0 : i32
    %c0_i32_0 = arith.constant 0 : i32
    %c0_i32_1 = arith.constant 0 : i32
    return %c0_i32, %c0_i32_0 : i32, i32
  }
  func.func @transform_3(%arg0: i32) -> (i32, i32) {
    %c0_i32 = arith.constant 0 : i32
    %c0_i32_0 = arith.constant 0 : i32
    %c0_i32_1 = arith.constant 0 : i32
    return %c0_i32, %c0_i32_0 : i32, i32
  }
  func.func @transform_4(%arg0: i32) -> (i32, i32) {
    %c0_i32 = arith.constant 0 : i32
    %c0_i32_0 = arith.constant 0 : i32
    %c0_i32_1 = arith.constant 0 : i32
    return %c0_i32, %c0_i32_0 : i32, i32
  }
  func.func @transform_5(%arg0: i32) -> (i32, i32, i32) {
    %c0_i32 = arith.constant 0 : i32
    %c0_i32_0 = arith.constant 0 : i32
    %c0_i32_1 = arith.constant 0 : i32
    return %arg0, %c0_i32, %c0_i32_0 : i32, i32, i32
  }
}

</mosaic_0001>

<bundles_post_ra>
// kernel: tpu_custom_call.1
= control target key start
LH: loop header
LB: loop body
LE: loop exit
PB: predicated region body
PF: predicated region fallthrough
CT: control target
= control target key end

     0   :  { %10 = vsyncpa [#allocation3], 0  ;;  %s1694_s0 = inlined_call_operand.vmem [shape: f32[2,32,16], index: 0, kind: input, shape index: {}]   ;;  %s1695_s1 = inlined_call_operand.hbm [shape: f32[17,32], index: 1, kind: input, shape index: {}]   ;;  %s1696_s2 = inlined_call_operand.vmem [shape: f32[32,384], index: 2, kind: input, shape index: {}]   ;;  %s1697_s3 = inlined_call_operand.hbm [shape: f32[128,128], index: 3, kind: input, shape index: {}]   ;;  %s1698_s4 = inlined_call_operand.vmem [shape: f32[1,512], index: 4, kind: input, shape index: {}]   ;;  %s1699_s5 = inlined_call_operand.hbm [shape: f32[2,1,128], index: 5, kind: output, shape index: {}]  }
   0x1   :  { %11 = vsyncpa [#allocation6], 0 }
   0x2   :  { %12 = vsyncpa [#allocation4], 0 }
   0x3   :  { %14 = vsyncpa [#allocation4 + $0x1], 0  ;;  %s1432_s18 = smov 0   ;;  %s1434_s19 = smov 0  }
   0x4   :  { %s1436_s20 = smov 0   ;;  %s1438_s21 = smov 0  }
   0x5 LB: > { %s1453_s22 = sadd.s32 4294967295, %s1393_s21   ;;  %s1065_s23 = sadd.s32 4294967294, %s1393_s21   ;;  %s1393_s21 = sphi %s1438_s21, %s1713_s21   ;;  %s1389_s20 = sphi %s1436_s20, %s1712_s20   ;;  %s1385_s19 = sphi %s1434_s19, %s1711_s19   ;;  %s1381_s18 = sphi %s1432_s18, %s1710_s18  }
   0x6   : > { %s1457_s24 = sadd.s32 1, %s1393_s21   ;;  %s137_s25 = sadd.s32 1, %s1389_s20 }
   0x7   : > { %s134_s26 = ssub.s32 %s1393_s21, %s1457_s24  ;;  %p147_p0 = scmp.ne.s32.totalorder %s1389_s20, %s1385_s19 }
   0x8   : > { %p135_p1 = scmp.eq.s32.totalorder %s134_s26, 0  ;;  %p148_p2 = scmp.eq.s32.totalorder %s1453_s22, 1 }
   0x9   : > { %p153_p3 = scmp.ne.s32.totalorder %s1385_s19, %s1381_s18  ;;  %p154_p4 = scmp.eq.s32.totalorder %s1065_s23, 1 }
   0xa   : > { %s1468_s27 = scalar_select %p135_p1, %s1389_s20, %s137_s25  }
   0xb   : > { %p1470_p5 = por %p148_p2, %p147_p0  ;;  %p1474_p6 = por %p154_p4, %p153_p3 }
   0xc   : > { %p1066_p7 = scmp.ge.s32.totalorder %s1393_s21, 1  ;;  %p161_p8 = scmp.lt.s32.totalorder %s1393_s21, 3 }
   0xd   : > { %s1702_s29 = scalar_select %p1474_p6, 1, 0 }
   0xe   : > { %p1700_p9 = scmp.eq.s32.totalorder %s1453_s22, 0  ;;  %p1481_p10 = pnand %p1066_p7, %p161_p8 }
   0xf   : > { %s1395_s6 = smov [#allocation2]   ;;  %s1396_s9 = smov [#allocation5]  }
  0x10   : > { %s173_s7 = sshll.u32 %s1395_s6, 4  ;;  %p1213_p11 = pneg %p1481_p10  ;;  %s174_s7 = int_to_ptr.vmem [resolvable:$true] %s173_s7 }
  0x11   : > { %s189_s10 = sshll.u32 %s1396_s9, 4  ;;  %s1284_s11 = scalar_lea.vmem %s174_s7, 384  ;;  %s190_s10 = int_to_ptr.vmem [resolvable:$true] %s189_s10 }
  0x12   : > { %p1489_p12 = pnand %p1700_p9, %p1213_p11  ;;  %p1285_p0 = scmp.ne.s32.totalorder %s174_s7, %s1284_s11 }
  0x13   : > { %p1292_p3 = scmp.lt.s32.totalorder %s174_s7, %s174_s7  ;;  %p1293_p4 = scmp.lt.s32.totalorder %s1284_s11, %s1284_s11 }
  0x14   : > { %p1275_p13 = pneg %p1489_p12 }
  0x15   : > { %p1294_p7 = por %p1293_p4, %p1292_p3 }
  0x16   : > { %p1287_p1 = pnand %p1285_p0, %p1275_p13 }
  0x18   : > { %p1288_p2 = pneg %p1287_p1 }
  0x1a   : > { %p1295_p8 = pnand %p1294_p7, %p1288_p2 }
  0x1c   : > { %1298 = shalt.err (!%p1295_p8)
}
  0x1d   : > { %s1397_s12 = smov 128   ;;  %s1398_s13 = smov 8  }
  0x1e   : > { %1216 = dma.hbm_to_vmem [thread:$0]  (!%p1489_p12), %s1695_s1, 384, %s174_s7, [#allocation3], %s1397_s12, %s1397_s12, %s1398_s13  }
  0x1f   : > { %s1310_s16 = scalar_lea.vmem %s190_s10, 2048  ;;  %p1318_p9 = scmp.lt.s32.totalorder %s190_s10, %s190_s10 }
  0x20   : > { %p1311_p11 = scmp.ne.s32.totalorder %s190_s10, %s1310_s16  ;;  %p1319_p6 = scmp.lt.s32.totalorder %s1310_s16, %s1310_s16 }
  0x22   : > { %p1313_p0 = pnand %p1311_p11, %p1275_p13  ;;  %p1320_p3 = por %p1319_p6, %p1318_p9 }
  0x24   : > { %p1314_p1 = pneg %p1313_p0 }
  0x26   : > { %p1321_p2 = pnand %p1320_p3, %p1314_p1 }
  0x28   : > { %1324 = shalt.err (!%p1321_p2)
}
  0x29   : > { %1219 = dma.hbm_to_vmem [thread:$0]  (!%p1489_p12), %s1697_s3, 2048, %s190_s10, [#allocation6], %s1397_s12, %s1397_s12, %s1398_s13  }
  0x2a   : > { %216 = sbr.rel (%p1481_p10) target bundleno = 1174 (0x496), region = 40  ;;  %p1705_p4 = scmp.eq.s32.totalorder (!%p1481_p10), %s1453_s22, 0 }
  0x2f   : > { %1368 = dma.done.wait (%p1705_p4), [#allocation3], 384   ;;  %p1706_p13 = pmov %p1705_p4 }
  0x30   : > { %p1707_p7 = pmov %p1705_p4 }
  0x31   : > { %1370 = vsyncadd (%p1706_p13), [#allocation3], 4294966912 }
  0x32   : > { %1372 = dma.done.wait (%p1707_p7), [#allocation6], 2048   ;;  %p1708_p6 = pmov %p1705_p4 }
  0x33   : > { %p247_p9 = scmp.lt.s32.totalorder %s1453_s22, 1  ;;  %v1399_v0 = vmov 0.0   ;;  %v262_v2 = vld [vmem:[%s1696_s2 + $0x50] sm:$0xff]  ;;  %v261_v3 = vld [vmem:[%s1696_s2 + $0x48] sm:$0xff]  ;;  %v259_v5 = vld [vmem:[%s1696_s2 + $0x38] sm:$0xff]  ;;  %vm284_vm0 = vcmask 261120   ;;  %v269_v27 = vlaneseq }
  0x34   : > { %1374 = vsyncadd (%p1708_p6), [#allocation6], 4294965248  ;;  %358 = vmatprep.mubr.f32.mxu0 %v1399_v0  ;;  %318 = vmatprep.subr.mxu0 %v262_v2  ;;  %v258_v6 = vld [vmem:[%s1696_s2 + $0x30] sm:$0xff]  ;;  %v256_v7 = vld [vmem:[%s1696_s2 + $0x20] sm:$0xff]  ;;  %vm1400_vm1 = vmmov 0   ;;  %vm772_vm5 = vcmask 1043456  }
  0x35   : > { %s248_s25 = scalar_select %p247_p9, %s1453_s22, 1  ;;  %319 = vmatpush1.msra.mxu0 %v261_v3  ;;  %v255_v8 = vld [vmem:[%s1696_s2 + $0x18] sm:$0xff]  ;;  %v253_v9 = vld [vmem:[%s1696_s2 + $0x8] sm:$0xff]  ;;  %v252_v12 = vld [vmem:[%s1696_s2] sm:$0xff]  ;;  %v1597_v30 = vshrl.u32 %v269_v27, 7  ;;  %vm776_vm6 = vcmask 125952  }
  0x36   : > { %320 = vmatprep.subr.mxu0 %v259_v5  ;;  %v263_v10 = vld [vmem:[%s1696_s2 + $0x58] sm:$0xff]  ;;  %v265_v13 = vld [vmem:[#allocation2] sm:$0xff]  ;;  %v266_v16 = vld [vmem:[#allocation2 + $0x8] sm:$0xff]  ;;  %vm800_vm7 = vcmask 130048   ;;  %s245_s23 = sand.u32 1, %s1385_s19   ;;  %s1401_s12 = smov [#allocation7]  }
  0x37   : > { %s1089_s26 = sshll.u32 %s248_s25, 5  ;;  %321 = vmatpush1.msra.mxu0 %v258_v6  ;;  %1143 = vmatprep.subr.mxu1 %v263_v10  ;;  %v260_v14 = vld [vmem:[%s1696_s2 + $0x40] sm:$0xff]  ;;  %v257_v17 = vld [vmem:[%s1696_s2 + $0x28] sm:$0xff]  ;;  %v254_v18 = vld [vmem:[%s1696_s2 + $0x10] sm:$0xff]  ;;  %v279_v32 = vsub.s32 2, %v1597_v30  ;;  %v275_v40 = vsub.s32 1, %v1597_v30 }
  0x38   : > { %s251_s7 = scalar_lea.vmem %s1694_s0, %s1089_s26  ;;  %322 = vmatprep.subr.mxu0 %v256_v7  ;;  %1144 = vmatpush3.msra.mxu1 %v263_v10  ;;  %v267_v19 = vld [vmem:[#allocation2 + $0x10] sm:$0x1]  ;;  %v1603_v34 = vld [vmem:[%s1698_s4] sm:$0xf]  ;;  %v655_v58 = vadd.s32 1, %v1597_v30  ;;  %v1615_v63 = vsub.s32 0, %v1597_v30 }
  0x39   : > { %v455_v1 = vld [vmem:[%s251_s7] sm:$0xff]  ;;  %v456_v4 = vld [vmem:[%s251_s7 + $0x8] sm:$0xff]  ;;  %v457_v11 = vld [vmem:[%s251_s7 + $0x10] sm:$0xff]  ;;  %323 = vmatpush1.msra.mxu0 %v255_v8  ;;  %1145 = vmatprep.subr.mxu1 %v260_v14  ;;  %v280_v36 = vrot.slane %v1603_v34, %v279_v32  ;;  %v276_v43 = vrot.slane %v1603_v34, %v275_v40  ;;  %s1086_s25 = sshll.u32 %s1453_s22, 4  ;;  %s246_s26 = scalar_lea.vmem [#allocation7], %s245_s23 }
  0x3a   : > { %459 = vxpose.xlu0.b32.start [1/4] (short) (narrow) %v455_v1, 16  ;;  %324 = vmatprep.subr.mxu0 %v253_v9  ;;  %v458_v15 = vld [vmem:[%s251_s7 + $0x18] sm:$0xff]  ;;  %s988_s30 = sshll.u32 %s246_s26, 4  ;;  %s1659_s9 = scalar_lea.hbm %s1699_s5, %s1086_s25  ;;  %s989_s30 = int_to_ptr.vmem [resolvable:$true] %s988_s30 }
  0x3b   : > { %325 = vmatpush1.msra.mxu0 %v252_v12  ;;  %1146 = vmatpush3.msra.mxu1 %v260_v14  ;;  %s976_s10 = scalar_lea.sflag [#allocation4], %s245_s23  ;;  %s1325_s11 = scalar_lea.vmem %s989_s30, 16 }
  0x3c   : > { %1075 = vmatmul.mubr.msk.f32.vlgmr.msra.gmra.mxu0 %vm284_vm0, %v265_v13  ;;  %1126 = vmatprep.subr.mxu0 %v1399_v0  ;;  %p1326_p10 = scmp.ne.s32.totalorder %s989_s30, %s1325_s11  ;;  %s1329_s22 = sshll.u32 %s1401_s12, 4  ;;  %s1330_s22 = int_to_ptr.vmem [resolvable:$false] %s1329_s22 }
  0x3d   : > { %1127 = vmatpush3.msra.mxu0 %v263_v10  ;;  %363 = vmatprep.mubr.f32.mxu0 %v1399_v0  ;;  %s1331_s13 = scalar_lea.vmem %s1330_s22, 32  ;;  %p1332_p11 = scmp.lt.s32.totalorder %s989_s30, %s1330_s22 }
  0x3e   : > { %460 = vxpose.xlu0.b32.cont [2/4] (short) (narrow) %v456_v4, 16  ;;  %1128 = vmatprep.subr.mxu0 %v1399_v0  ;;  %p1327_p12 = pnand %p1326_p10, %p1470_p5  ;;  %p1333_p0 = scmp.lt.s32.totalorder %s1331_s13, %s1325_s11 }
  0x3f   : > { %1129 = vmatpush3.msra.mxu0 %v260_v14  ;;  %1147 = vmatprep.subr.mxu1 %v257_v17 }
  0x40   : > { %1076 = vmatmul.mubr.msk.f32.gmra.mxu0 %vm284_vm0, %v266_v16  ;;  %1130 = vmatprep.subr.mxu0 %v1399_v0  ;;  %p1328_p8 = pneg %p1327_p12  ;;  %p1334_p1 = por %p1333_p0, %p1332_p11 }
  0x41   : > { %368 = vmatprep.mubr.f32.mxu0 %v1399_v0  ;;  %1131 = vmatpush3.msra.mxu0 %v257_v17 }
  0x42   : > { %461 = vxpose.xlu0.b32.cont [3/4] (short) (narrow) %v457_v11, 16  ;;  %1132 = vmatprep.subr.mxu0 %v1399_v0  ;;  %v272_v11 = vrot.slane %v1603_v34, %v1615_v63  ;;  %p1335_p3 = pnand %p1334_p1, %p1328_p8 }
  0x43   : > { %1133 = vmatpush3.msra.mxu0 %v254_v18  ;;  %1148 = vmatpush3.msra.mxu1 %v257_v17 }
  0x44   : > { %1077 = vmatmul.mubr.msk.f32.gmra.mxu0 %vm284_vm0, %v267_v19  ;;  %521 = vmatprep.subr.mxu0 %v262_v2 }
  0x45   : > { %1134 = vmatprep.mubr.msk.f32.mxu0 %vm1400_vm1, %v1399_v0  ;;  %1149 = vmatprep.subr.mxu1 %v254_v18 }
  0x46   : > { %462 = vxpose.xlu0.b32.end [4/4] (short) (narrow) %v458_v15, 16  ;;  %1150 = vmatpush3.msra.mxu1 %v254_v18 }
  0x47   : > { %1161 = vmatprep.subr.mxu1 %v1399_v0 }
  0x48   : > { %1135 = vmatmul.mubr.msk.f32.vlgmr.msra.gmra.mxu0 %vm284_vm0, %v265_v13 }
  0x49   : > { %522 = vmatpush1.msra.mxu0 %v261_v3  ;;  %1137 = vmatprep.mubr.msk.f32.mxu0 %vm1400_vm1, %v1399_v0 }
  0x4a   : > { %523 = vmatprep.subr.mxu0 %v259_v5  ;;  %v650_v5 = vand.u32 127, %v269_v27 }
  0x4b   : > { %524 = vmatpush1.msra.mxu0 %v258_v6  ;;  %v653_v6 = vmul.u32 8, %v1597_v30 }
  0x4c   : > { %1138 = vmatmul.mubr.msk.f32.gmra.mxu0 %vm284_vm0, %v266_v16  ;;  %525 = vmatprep.subr.mxu0 %v256_v7  ;;  %v656_v7 = vmul.u32 8, %v655_v58  ;;  %v891_v58 = vld [vmem:[#allocation5 + $0x40] sm:$0xff] }
  0x4d   : > { %1140 = vmatprep.mubr.msk.f32.mxu0 %vm1400_vm1, %v1399_v0  ;;  %526 = vmatpush1.msra.mxu0 %v255_v8  ;;  %vm654_vm2 = vcmp.ge.s32.totalorder %v650_v5, %v653_v6 }
  0x4e   : > { %527 = vmatprep.subr.mxu0 %v253_v9  ;;  %vm657_vm3 = vcmp.lt.s32.totalorder %v650_v5, %v656_v7 }
  0x4f   : > { %528 = vmatpush1.msra.mxu0 %v252_v12  ;;  %vm658_vm4 = vmand %vm654_vm2, %vm657_vm3 }
  0x50   : > { %1141 = vmatmul.mubr.msk.f32.gmra.mxu0 %vm284_vm0, %v267_v19  ;;  %1154 = vmatprep.subr.mxu0 %v1399_v0  ;;  %v1623_v27 = vsel %vm658_vm4, 1.0, %v1399_v0 }
  0x51   : > { %561 = vmatprep.mubr.f32.mxu0 %v1399_v0 }
  0xb6   : > { %v475_v20 = vpop.trf.xlu0 }
  0xb7   : > { %1081 = vmatmul.mubr.msk.f32.vlgmr.msra.gmra.mxu0 %vm284_vm0, %v475_v20  ;;  %1151 = vmatprep.mubr.msk.f32.mxu1 %vm284_vm0, %v475_v20 }
  0xb8   : > { %567 = vmatprep.mubr.f32.mxu0 %v1399_v0 }
  0xba   : > { %v476_v21 = vpop.trf.xlu0 }
  0xbb   : > { %1082 = vmatmul.mubr.msk.f32.gmra.mxu0 %vm284_vm0, %v476_v21  ;;  %1152 = vmatmul.mubr.msk.f32.vlgmr.msra.gmra.mxu1 %vm284_vm0, %v476_v21 }
  0xbc   : > { %1158 = vmatprep.mubr.msk.f32.mxu0 %vm1400_vm1, %v1399_v0  ;;  %1165 = vmatprep.mubr.msk.f32.mxu1 %vm1400_vm1, %v1399_v0 }
  0xfc   : > { %v360_v22 = vpop.f32.mrf.mxu0 }
  0xfe   : > { %v361_v23 = vpop.f32.mrf.mxu0 }
  0xff   : > { %v362_v59 = vadd.f32 %v361_v23, %v276_v43 }
 0x100   : > { %v365_v24 = vpop.f32.mrf.mxu0 }
 0x102   : > { %v366_v25 = vpop.f32.mrf.mxu0 }
 0x103   : > { %v367_v47 = vadd.f32 %v366_v25, %v276_v43 }
 0x104   : > { %v1593_v26 = vpop.f32.mrf.mxu0 }
 0x105   : > { %v371_v18 = vadd.f32 %v1593_v26, %v272_v11 }
 0x106   : > { %v1595_v28 = vpop.f32.mrf.mxu0 }
 0x107   : > { %v373_v22 = vadd.f32 %v1595_v28, %v276_v43 }
 0x108   : > { %v441_v29 = vpop.f32.mrf.mxu0 }
 0x109   : > { %v442_v48 = vadd.f32 %v441_v29, %v280_v36 }
 0x10a   : > { %v1136_v31 = vpop.f32.mrf.mxu0 }
 0x10c   : > { %v446_v33 = vpop.f32.mrf.mxu0 }
 0x10d   : > { %v447_v44 = vadd.f32 %v446_v33, %v280_v36 }
 0x10e   : > { %v1139_v35 = vpop.f32.mrf.mxu0 }
 0x110   : > { %v451_v37 = vpop.f32.mrf.mxu0 }
 0x111   : > { %v1606_v38 = vadd.f32 %v451_v37, %v280_v36 }
 0x112   : > { %v1142_v39 = vpop.f32.mrf.mxu0 }
 0x177   : > { %v563_v41 = vpop.f32.mrf.mxu0 }
 0x179   : > { %v565_v42 = vpop.f32.mrf.mxu0 }
 0x17a   : > { %v660_v1 = vadd.f32 %v565_v42, %v362_v59  ;;  %v890_v59 = vld [vmem:[#allocation5 + $0x38] sm:$0xff] }
 0x17b   : > { %v569_v45 = vpop.f32.mrf.mxu0  ;;  %v1153_v46 = vpop.f32.mrf.mxu1 }
 0x17c   : > { %v664_v49 = vadd.f32 %v569_v45, %v563_v41  ;;  %v663_v50 = vadd.f32 %v1153_v46, %v447_v44 }
 0x17d   : > { %v571_v51 = vpop.f32.mrf.mxu0  ;;  %v640_v52 = vpop.f32.mrf.mxu1 }
 0x17e   : > { %v665_v53 = vrot.slane %v664_v49, 4  ;;  %v662_v54 = vadd.f32 %v571_v51, %v367_v47  ;;  %v671_v55 = vadd.f32 %v571_v51, %v565_v42  ;;  %v661_v56 = vadd.f32 %v640_v52, %v442_v48  ;;  %1162 = vmatpush3.msra.mxu1 %v663_v50  ;;  %v898_v51 = vld [vmem:[#allocation5 + $0x78] sm:$0xff] }
 0x17f   : > { %v678_v57 = vadd.f32 %v1153_v46, %v640_v52  ;;  %1163 = vmatprep.subr.mxu1 %v1399_v0  ;;  %v897_v52 = vld [vmem:[#allocation5 + $0x70] sm:$0xff] }
 0x180   : > { %v666_v60 = vadd.f32 %v665_v53, %v664_v49  ;;  %v672_v61 = vrot.slane %v671_v55, 4  ;;  %1155 = vmatpush3.xpose.msra.mxu0 %v662_v54  ;;  %1164 = vmatpush3.msra.mxu1 %v661_v56  ;;  %v896_v53 = vld [vmem:[#allocation5 + $0x68] sm:$0xff]  ;;  %v895_v54 = vld [vmem:[#allocation5 + $0x60] sm:$0xff]  ;;  %v893_v56 = vld [vmem:[#allocation5 + $0x50] sm:$0xff] }
 0x181   : > { %v679_v62 = vrot.slane %v678_v57, 4  ;;  %1156 = vmatprep.subr.mxu0 %v1399_v0  ;;  %1168 = vmatprep.subr.mxu1 %v1399_v0 }
 0x182   : > { %v667_v2 = vrot.slane %v666_v60, 2  ;;  %v673_v3 = vadd.f32 %v672_v61, %v671_v55  ;;  %v894_v55 = vld [vmem:[#allocation5 + $0x58] sm:$0xff]  ;;  %v888_v61 = vld [vmem:[#allocation5 + $0x28] sm:$0xff] }
 0x183   : > { %v680_v4 = vadd.f32 %v679_v62, %v678_v57  ;;  %v892_v57 = vld [vmem:[#allocation5 + $0x48] sm:$0xff]  ;;  %v887_v62 = vld [vmem:[#allocation5 + $0x20] sm:$0xff] }
 0x184   : > { %v668_v8 = vadd.f32 %v667_v2, %v666_v60  ;;  %v674_v9 = vrot.slane %v673_v3, 2  ;;  %1157 = vmatpush3.xpose.msra.mxu0 %v660_v1  ;;  %v889_v60 = vld [vmem:[#allocation5 + $0x30] sm:$0xff]  ;;  %v884_v2 = vld [vmem:[#allocation5 + $0x8] sm:$0xff] }
 0x185   : > { %v681_v10 = vrot.slane %v680_v4, 2  ;;  %v885_v1 = vld [vmem:[#allocation5 + $0x10] sm:$0xff] }
 0x186   : > { %v669_v12 = vrot.slane %v668_v8, 1  ;;  %v675_v13 = vadd.f32 %v674_v9, %v673_v3  ;;  %v883_v3 = vld [vmem:[#allocation5] sm:$0xff] }
 0x187   : > { %v682_v14 = vadd.f32 %v681_v10, %v680_v4 }
 0x188   : > { %v670_v15 = vadd.f32 %v669_v12, %v668_v8  ;;  %v676_v16 = vrot.slane %v675_v13, 1 }
 0x189   : > { %v683_v17 = vrot.slane %v682_v14, 1 }
 0x18a   : > { %v686_v19 = vmul.f32 0.0625, %v670_v15  ;;  %v677_v20 = vadd.f32 %v676_v16, %v675_v13 }
 0x18b   : > { %v684_v21 = vadd.f32 %v683_v17, %v682_v14 }
 0x18c   : > { %v689_v23 = vadd.f32 %v686_v19, %v371_v18  ;;  %v687_v24 = vmul.f32 0.0625, %v677_v20 }
 0x18d   : > { %v688_v25 = vmul.f32 0.0625, %v684_v21  ;;  %v901_v21 = vsub.s32 3, %v1597_v30 }
 0x18e   : > { %v695_v29 = vrot.slane %v689_v23, %v1615_v63  ;;  %v690_v31 = vadd.f32 %v687_v24, %v373_v22 }
 0x18f   : > { %v691_v32 = vadd.f32 %v688_v25, %v1606_v38  ;;  %v902_v22 = vrot.slane %v1603_v34, %v901_v21 }
 0x190   : > { %v696_v33 = vmul.f32 %v695_v29, %v1623_v27  ;;  %v770_v26 = vrot.slane %v690_v31, %v1615_v63 }
 0x191   : > { %v798_v47 = vrot.slane %v691_v32, %v1615_v63  ;;  %v886_v63 = vld [vmem:[#allocation5 + $0x18] sm:$0xff] }
 0x192   : > { %1159 = vmatmul.mubr.f32.vlgmr.msra.gmra.mxu0 %v696_v33  ;;  %v771_v35 = vmul.f32 %v770_v26, %v696_v33 }
 0x194   : > { %v773_v28 = vsel %vm772_vm5, %v771_v35, 0.0 }
 0x195   : > { %774 = vadd.xlane.f32.xlu1 %v773_v28 }
 0x21e   : > { %v775_v40 = vpop.xlane.xlu1 %774 }
 0x252   : > { %v763_v36 = vpop.f32.mrf.mxu0 }
 0x253   : > { %v777_v37 = vsel %vm776_vm6, %v763_v36, -inf }
 0x254   : > { %778 = vmax.xlane.f32.xlu1 %v777_v37  ;;  %v1160_v39 = vpop.f32.mrf.mxu0 }
 0x2dd   : > { %v779_v41 = vpop.xlane.xlu1 %778 }
 0x2de   : > { %v780_v42 = vmax.f32 %v779_v41, %v775_v40 }
 0x2e0   : > { %v781_v38 = vsub.f32 %v763_v36, %v780_v42  ;;  %v784_v43 = vsub.f32 %v775_v40, %v780_v42 }
 0x2e2   : > { %v782_v44 = vmul.f32 1.442695, %v781_v38  ;;  %v785_v45 = vmul.f32 1.442695, %v784_v43 }
 0x2e4   : > { %1267 = vpow2.f32 %v782_v44 }
 0x2e5   : > { %1269 = vpow2.f32 %v785_v45 }
 0x2f1   : > { %v1268_v46 = vpop.eup %1267 }
 0x2f2   : > { %v1270_v48 = vpop.eup %1269  ;;  %1166 = vmatmul.mubr.msk.f32.vlgmr.msra.gmra.mxu1 %vm800_vm7, %v1268_v46  ;;  %v787_v49 = vsel %vm776_vm6, %v1268_v46, 0.0 }
 0x2f3   : > { %788 = vadd.xlane.f32.xlu1 %v787_v49  ;;  %v799_v50 = vmul.f32 %v1270_v48, %v798_v47  ;;  %1200 = vmatprep.mubr.msk.f32.mxu1 %vm1400_vm1, %v1399_v0 }
 0x2f4   : > { %1169 = vmatpush3.msra.mxu1 %v898_v51 }
 0x2f5   : > { %1170 = vmatprep.subr.mxu1 %v1399_v0 }
 0x2f6   : > { %1171 = vmatpush3.msra.mxu1 %v897_v52 }
 0x2f7   : > { %1172 = vmatprep.subr.mxu1 %v1399_v0 }
 0x2f8   : > { %1173 = vmatpush3.msra.mxu1 %v896_v53 }
 0x2f9   : > { %1174 = vmatprep.subr.mxu1 %v1399_v0 }
 0x2fa   : > { %1175 = vmatpush3.msra.mxu1 %v895_v54 }
 0x2fb   : > { %1176 = vmatprep.subr.mxu1 %v1399_v0 }
 0x2fc   : > { %1177 = vmatpush3.msra.mxu1 %v894_v55 }
 0x2fd   : > { %1178 = vmatprep.subr.mxu1 %v1399_v0 }
 0x2fe   : > { %1179 = vmatpush3.msra.mxu1 %v893_v56 }
 0x2ff   : > { %1180 = vmatprep.subr.mxu1 %v1399_v0 }
 0x300   : > { %1181 = vmatpush3.msra.mxu1 %v892_v57 }
 0x301   : > { %1182 = vmatprep.subr.mxu1 %v1399_v0 }
 0x302   : > { %1183 = vmatpush3.msra.mxu1 %v891_v58 }
 0x303   : > { %1184 = vmatprep.subr.mxu1 %v1399_v0 }
 0x304   : > { %1185 = vmatpush3.msra.mxu1 %v890_v59 }
 0x305   : > { %1186 = vmatprep.subr.mxu1 %v1399_v0 }
 0x306   : > { %1187 = vmatpush3.msra.mxu1 %v889_v60 }
 0x307   : > { %1188 = vmatprep.subr.mxu1 %v1399_v0 }
 0x308   : > { %1189 = vmatpush3.msra.mxu1 %v888_v61 }
 0x309   : > { %1190 = vmatprep.subr.mxu1 %v1399_v0 }
 0x30a   : > { %1191 = vmatpush3.msra.mxu1 %v887_v62 }
 0x30b   : > { %1192 = vmatprep.subr.mxu1 %v1399_v0 }
 0x30c   : > { %1193 = vmatpush3.msra.mxu1 %v886_v63 }
 0x30d   : > { %1194 = vmatprep.subr.mxu1 %v1399_v0 }
 0x30e   : > { %1195 = vmatpush3.msra.mxu1 %v885_v1 }
 0x30f   : > { %1196 = vmatprep.subr.mxu1 %v1399_v0 }
 0x310   : > { %1197 = vmatpush3.msra.mxu1 %v884_v2 }
 0x311   : > { %1198 = vmatprep.subr.mxu1 %v1399_v0 }
 0x312   : > { %1199 = vmatpush3.msra.mxu1 %v883_v3 }
 0x37c   : > { %v789_v4 = vpop.xlane.xlu1 %788 }
 0x37d   : > { %v790_v5 = vadd.f32 %v1270_v48, %v789_v4 }
 0x37f   : > { %1271 = vrcp.f32 %v790_v5 }
 0x38c   : > { %v1272_v6 = vpop.eup %1271 }
 0x38d   : > { %v792_v7 = vmul.f32 %v1272_v6, %v790_v5 }
 0x38f   : > { %v793_v8 = vsub.f32 2.0, %v792_v7 }
 0x391   : > { %v794_v10 = vmul.f32 %v1272_v6, %v793_v8 }
 0x3b2   : > { %v870_v9 = vpop.f32.mrf.mxu1 }
 0x3b3   : > { %v871_v11 = vadd.f32 %v870_v9, %v799_v50 }
 0x3b4   : > { %v1167_v12 = vpop.f32.mrf.mxu1 }
 0x3b5   : > { %v874_v13 = vmul.f32 %v871_v11, %v794_v10 }
 0x3b7   : > { %v875_v14 = vmul.f32 %v874_v13, %v1623_v27 }
 0x3b9   : > { %v876_v15 = vsel %vm772_vm5, %v875_v14, 0.0 }
 0x3ba   : > { %v877_v16 = vrot.slane %v876_v15, 4 }
 0x3bc   : > { %v878_v0 = vadd.f32 %v877_v16, %v876_v15 }
 0x3be   : > { %v879_v17 = vrot.slane %v878_v0, 2 }
 0x3c0   : > { %v880_v18 = vadd.f32 %v879_v17, %v878_v0 }
 0x3c2   : > { %v881_v19 = vrot.slane %v880_v18, 1 }
 0x3c4   : > { %v882_v20 = vadd.f32 %v881_v19, %v880_v18 }
 0x3c6   : > { %1201 = vmatmul.mubr.f32.vlgmr.msra.gmra.mxu1 %v882_v20 }
 0x486   : > { %v970_v23 = vpop.f32.mrf.mxu1 }
 0x487   : > { %v971_v24 = vadd.f32 %v970_v23, %v902_v22 }
 0x488   : > { %v1202_v25 = vpop.f32.mrf.mxu1 }
 0x489   : > { %974 = vst [vmem:[%s246_s26] sm:$0x1] %v971_v24 }
 0x48a   : > { %1338 = shalt.err (!%p1335_p3)
}
 0x48b   : > { %s1339_s14 = scalar_lea.hbm %s1659_s9, 16  ;;  %s1343_s16 = scalar_lea.hbm %s1699_s5, 32 }
 0x48c   : > { %p1340_p2 = scmp.ne.s32.totalorder %s1659_s9, %s1339_s14  ;;  %p1344_p7 = scmp.lt.s32.totalorder %s1659_s9, %s1699_s5 }
 0x48d   : > { %p1345_p6 = scmp.lt.s32.totalorder %s1343_s16, %s1339_s14 }
 0x48e   : > { %p1341_p4 = pnand %p1340_p2, %p1470_p5 }
 0x48f   : > { %p1346_p9 = por %p1345_p6, %p1344_p7 }
 0x490   : > { %p1342_p13 = pneg %p1341_p4 }
 0x492   : > { %p1347_p10 = pnand %p1346_p9, %p1342_p13 }
 0x494   : > { %1350 = shalt.err (!%p1347_p10)
}
 0x495   : > { %1211 = dma.vmem_to_hbm [thread:$0]  (%p1470_p5), %s989_s30, 16, %s1659_s9, %s976_s10  }
 0x496 PF: > { %p1228_p12 = scmp.ge.s32.totalorder %s1393_s21, 2  ;;  %s1000_s25 = sand.u32 1, %s1381_s18  }
 0x497   : > { %p1709_p8 = scmp.ne.s32.totalorder %s1702_s29, 0  ;;  %s1001_s26 = scalar_lea.sflag [#allocation4], %s1000_s25 }
 0x499   : > { %p1221_p11 = pnand %p1228_p12, %p1709_p8 }
 0x49b   : > { %p1222_p0 = pneg %p1221_p11 }
 0x49d   : > { %1376 = dma.done.wait (%p1222_p0), %s1001_s26, 16  }
 0x49e   : > { %1378 = vsyncadd (%p1222_p0), %s1001_s26, 4294967280  ;;  %p17_p1 = scmp.ge.s32.totalorder %s1457_s24, 4   ;;  %s1710_s18 = smov %s1385_s19 }
 0x49f   : > { %s1711_s19 = smov %s1389_s20  ;;  %s1712_s20 = smov %s1468_s27 }
 0x4a0   : > { %s1713_s21 = smov %s1457_s24  ;;  %19 = sbr.rel (!%p17_p1) target bundleno = 5 (0x5), region = 84 }
 0x4a5   :  { %1005 = vsyncpa [#allocation3], 1 }
 0x4a6   :  { %1007 = vsyncpa [#allocation3 + $0x1], 1 }
 0x4a7   :  { %1008 = vsyncpa [#allocation6], 1 }
 0x4a8   :  { %1009 = vsyncpa [#allocation4], 1 }
 0x4a9   :  { %1011 = vsyncpa [#allocation4 + $0x1], 1 }

</bundles_post_ra>
